<compile_context>
chip_gen: v6e
topology: v6e:2x2x1
jax: 0.10.0
libtpu: 0.0.40
codegen_flags: <defaults>
</compile_context>

<pallas_src>
import functools

import jax
import jax.numpy as jnp
import numpy as np
from jax.experimental import pallas as pl
from jax.experimental.pallas import tpu as pltpu


def _conv3_sigmoid(m, w_ref, b_ref):
    """3-tap Conv1d (zero padded) along the channel axis + sigmoid.

    m     : (C, 1) f32 pooled means (channels on sublanes)
    w_ref : SMEM (3,) f32 conv taps
    b_ref : SMEM (1,) f32 conv bias
    """
    C = m.shape[0]
    w0, w1, w2 = w_ref[0], w_ref[1], w_ref[2]
    bias = b_ref[0]
    cidx = jax.lax.broadcasted_iota(jnp.int32, (C, 1), 0)
    # roll lands on the XLU slot; wrapped boundary elements masked to zero
    # (= the Conv1d zero padding).
    m_prev = jnp.where(cidx == 0, 0.0, pltpu.roll(m, shift=1, axis=0))      # m[i-1]
    m_next = jnp.where(cidx == C - 1, 0.0, pltpu.roll(m, shift=C - 1, axis=0))  # m[i+1]
    y = w0 * m_prev + w1 * m + w2 * m_next + bias
    return jax.nn.sigmoid(y)                                    # (C, 1) f32


# ---------------------------------------------------------------------------
# Path A: fused single-pass kernel (small slabs) -- 2x|x| HBM traffic.
# ---------------------------------------------------------------------------
def _eca_fused_kernel(w_ref, b_ref, x_ref, o_ref):
    x = x_ref[...]                                              # (C, HW), input dtype
    m = jnp.mean(x, axis=-1, keepdims=True, dtype=jnp.float32)  # f32 pool accumulation
    s = _conv3_sigmoid(m, w_ref, b_ref)
    o_ref[...] = x * s.astype(o_ref.dtype)                      # multiply in input dtype


# ---------------------------------------------------------------------------
# Path B: tiled two-kernel form (bounded VMEM, arbitrary C/H/W).
# ---------------------------------------------------------------------------
def _eca_pool_kernel(w_ref, b_ref, x_ref, s_ref, acc_ref, *, hw_total, thw):
    hw_i = pl.program_id(1)

    @pl.when(hw_i == 0)
    def _():
        acc_ref[...] = jnp.zeros_like(acc_ref)

    x = x_ref[...]                                              # (C, THW)
    if hw_total % thw != 0:
        # Last tile is ragged: zero out lanes past the true spatial extent.
        lane = jax.lax.broadcasted_iota(jnp.int32, x.shape, 1) + hw_i * thw
        x = jnp.where(lane < hw_total, x, jnp.zeros_like(x))
    acc_ref[...] += jnp.sum(x, axis=-1, keepdims=True, dtype=jnp.float32)

    @pl.when(hw_i == pl.num_programs(1) - 1)
    def _():
        m = acc_ref[...] * (1.0 / hw_total)
        s_ref[...] = _conv3_sigmoid(m, w_ref, b_ref)


def _eca_scale_kernel(s_ref, x_ref, o_ref):
    o_ref[...] = x_ref[...] * s_ref[...].astype(o_ref.dtype)


def _pick_hw_tile(C, HW, itemsize):
    """Spatial tile: multiple of 128 lanes, block ~<= 1 MiB, capped at 2048 lanes."""
    if HW <= 2048 and (C * HW * itemsize) <= (1 << 20):
        return HW                               # single full-width (lane-dense) tile
    budget_lanes = max(128, (1 << 20) // max(1, C * itemsize))
    thw = min(2048, budget_lanes)
    thw = max(128, (thw // 128) * 128)
    return min(thw, HW)


def eca_attention(x, conv_w, conv_b, *, force_tiled=False, hw_tile=None):
    """ECA forward.  x: (B, C, H, W) NCHW.  conv_w: (1, 1, 3).  conv_b: (1,)."""
    B, C, H, W = x.shape
    HW = H * W
    x2 = x.reshape(B, C, HW)
    w = conv_w.reshape(-1).astype(jnp.float32)
    b = conv_b.reshape(-1).astype(jnp.float32)

    itemsize = x.dtype.itemsize
    slab_bytes = C * HW * itemsize
    smem_spec = pl.BlockSpec(memory_space=pltpu.MemorySpace.SMEM)

    if not force_tiled and 4 * slab_bytes <= (8 << 20):
        # ---- fused single-pass kernel: grid over batch only ----------------
        out = pl.pallas_call(
            _eca_fused_kernel,
            out_shape=jax.ShapeDtypeStruct((B, C, HW), x.dtype),
            grid=(B,),
            in_specs=[
                smem_spec,                                          # conv taps
                smem_spec,                                          # conv bias
                pl.BlockSpec((None, C, HW), lambda bi: (bi, 0, 0)),
            ],
            out_specs=pl.BlockSpec((None, C, HW), lambda bi: (bi, 0, 0)),
            compiler_params=pltpu.CompilerParams(
                dimension_semantics=("parallel",),
                # explicit VMEM budget: 2 streams x 2 buffers x slab + slack
                vmem_limit_bytes=int(min(48 << 20, max(16 << 20, 5 * slab_bytes))),
            ),
        )(w, b, x2)
        return out.reshape(B, C, H, W)

    # ---- tiled two-kernel path ---------------------------------------------
    thw = hw_tile if hw_tile is not None else _pick_hw_tile(C, HW, itemsize)
    n_hw = pl.cdiv(HW, thw)

    scales = pl.pallas_call(
        functools.partial(_eca_pool_kernel, hw_total=HW, thw=thw),
        out_shape=jax.ShapeDtypeStruct((B, C, 1), jnp.float32),
        grid=(B, n_hw),                                             # reduction axis last
        in_specs=[
            smem_spec,
            smem_spec,
            pl.BlockSpec((None, C, thw), lambda bi, hi: (bi, 0, hi)),
        ],
        out_specs=pl.BlockSpec((None, C, 1), lambda bi, hi: (bi, 0, 0)),
        scratch_shapes=[pltpu.VMEM((C, 1), jnp.float32)],
        compiler_params=pltpu.CompilerParams(
            dimension_semantics=("parallel", "arbitrary")),
    )(w, b, x2)

    out = pl.pallas_call(
        _eca_scale_kernel,
        out_shape=jax.ShapeDtypeStruct((B, C, HW), x.dtype),
        grid=(B, n_hw),
        in_specs=[
            pl.BlockSpec((None, C, 1), lambda bi, hi: (bi, 0, 0)),
            pl.BlockSpec((None, C, thw), lambda bi, hi: (bi, 0, hi)),
        ],
        out_specs=pl.BlockSpec((None, C, thw), lambda bi, hi: (bi, 0, hi)),
        compiler_params=pltpu.CompilerParams(
            dimension_semantics=("parallel", "parallel")),
    )(scales, x2)
    return out.reshape(B, C, H, W)


def eca_reference(x, conv_w, conv_b):
    """Pure-JAX reference matching the PyTorch forward."""
    y = jnp.mean(x, axis=(2, 3))                              # (B, C)
    yp = jnp.pad(y, ((0, 0), (1, 1)))                         # zero pad along C
    w = conv_w.reshape(-1)
    conv = w[0] * yp[:, :-2] + w[1] * yp[:, 1:-1] + w[2] * yp[:, 2:] + conv_b[0]
    s = jax.nn.sigmoid(conv)                                  # (B, C)
    return x * s[:, :, None, None]


if __name__ == "__main__":
    key = jax.random.PRNGKey(0)
    k_x, k_w, k_b, k_x2 = jax.random.split(key, 4)

    # Conv1d(1, 1, kernel_size=3, padding=1) parameters
    # (PyTorch default init is U(-1/sqrt(3), 1/sqrt(3))).
    bound = 1.0 / np.sqrt(3.0)
    conv_w = jax.random.uniform(k_w, (1, 1, 3), jnp.float32, -bound, bound)
    conv_b = jax.random.uniform(k_b, (1,), jnp.float32, -bound, bound)

    # 1) Small shape -> fused single-pass kernel (grid over batch).
    B, C, H, W = 2, 8, 16, 16
    x = jax.random.normal(k_x, (B, C, H, W), dtype=jnp.float32)
    out = jax.block_until_ready(eca_attention(x, conv_w, conv_b))
    ref = eca_reference(x, conv_w, conv_b)
    np.testing.assert_allclose(np.asarray(out), np.asarray(ref), rtol=1e-4, atol=1e-5)

    # 2) Same semantics through the tiled two-kernel path (ragged spatial tiles:
    #    HW = 400 -> 4 tiles of 128 lanes, last tile masked in the pool).
    B2, C2, H2, W2 = 2, 8, 20, 20
    x2 = jax.random.normal(k_x2, (B2, C2, H2, W2), dtype=jnp.float32)
    out2 = jax.block_until_ready(
        eca_attention(x2, conv_w, conv_b, force_tiled=True, hw_tile=128))
    ref2 = eca_reference(x2, conv_w, conv_b)
    np.testing.assert_allclose(np.asarray(out2), np.asarray(ref2), rtol=1e-4, atol=1e-5)

    print("KERNEL_OK")
</pallas_src>

<mosaic_0001>
module attributes {stable_mosaic.version = 11 : i64} {
  func.func @_eca_fused_kernel(%arg0: i32, %arg1: memref<3xf32, #tpu.memory_space<smem>>, %arg2: memref<1xf32, #tpu.memory_space<smem>>, %arg3: memref<1x8x256xf32, #tpu.memory_space<vmem>>, %arg4: memref<1x8x256xf32, #tpu.memory_space<vmem>>) attributes {dimension_semantics = [#tpu.dimension_semantics<parallel>], iteration_bounds = array<i64: 2>, scalar_prefetch = 0 : i64, scratch_operands = 0 : i64, tpu.core_type = #tpu.core_type<tc>, window_params = [{transform_indices = @transform_0, window_bounds = array<i64: 3>}, {transform_indices = @transform_1, window_bounds = array<i64: 1>}, {transform_indices = @transform_2, window_bounds = array<i64: 1, 8, 256>}, {transform_indices = @transform_3, window_bounds = array<i64: 1, 8, 256>}]} {
    %c0 = arith.constant 0 : index
    %c0_0 = arith.constant 0 : index
    %c0_1 = arith.constant 0 : index
    %0 = vector.load %arg3[%c0, %c0_0, %c0_1] : memref<1x8x256xf32, #tpu.memory_space<vmem>>, vector<1x8x256xf32>
    %1 = vector.shape_cast %0 : vector<1x8x256xf32> to vector<8x256xf32>
    %cst = arith.constant dense<0.000000e+00> : vector<8xf32>
    %2 = vector.multi_reduction <add>, %1, %cst [1] : vector<8x256xf32> to vector<8xf32>
    %3 = vector.shape_cast %2 : vector<8xf32> to vector<8x1xf32>
    %cst_2 = arith.constant 2.560000e+02 : f32
    %4 = vector.broadcast %cst_2 : f32 to vector<8x1xf32>
    %5 = arith.divf %3, %4 : vector<8x1xf32>
    %c0_3 = arith.constant 0 : index
    %6 = memref.load %arg1[%c0_3] : memref<3xf32, #tpu.memory_space<smem>>
    %c1 = arith.constant 1 : index
    %7 = memref.load %arg1[%c1] : memref<3xf32, #tpu.memory_space<smem>>
    %c2 = arith.constant 2 : index
    %8 = memref.load %arg1[%c2] : memref<3xf32, #tpu.memory_space<smem>>
    %c0_4 = arith.constant 0 : index
    %9 = memref.load %arg2[%c0_4] : memref<1xf32, #tpu.memory_space<smem>>
    %10 = tpu.iota {dimensions = array<i32: 0>} : vector<8x1xi32>
    %c0_i32 = arith.constant 0 : i32
    %11 = vector.broadcast %c0_i32 : i32 to vector<8x1xi32>
    %12 = arith.cmpi eq, %10, %11 : vector<8x1xi32>
    %c1_i32 = arith.constant 1 : i32
    %13 = tpu.dynamic_rotate %5 by %c1_i32 dim 0 : vector<8x1xf32>, i32 -> vector<8x1xf32>
    %cst_5 = arith.constant 0.000000e+00 : f32
    %14 = vector.broadcast %cst_5 : f32 to vector<8x1xf32>
    %15 = arith.select %12, %14, %13 : vector<8x1xi1>, vector<8x1xf32>
    %c7_i32 = arith.constant 7 : i32
    %16 = vector.broadcast %c7_i32 : i32 to vector<8x1xi32>
    %17 = arith.cmpi eq, %10, %16 : vector<8x1xi32>
    %c7_i32_6 = arith.constant 7 : i32
    %18 = tpu.dynamic_rotate %5 by %c7_i32_6 dim 0 : vector<8x1xf32>, i32 -> vector<8x1xf32>
    %cst_7 = arith.constant 0.000000e+00 : f32
    %19 = vector.broadcast %cst_7 : f32 to vector<8x1xf32>
    %20 = arith.select %17, %19, %18 : vector<8x1xi1>, vector<8x1xf32>
    %21 = vector.broadcast %6 : f32 to vector<8x1xf32>
    %22 = arith.mulf %21, %15 : vector<8x1xf32>
    %23 = vector.broadcast %7 : f32 to vector<8x1xf32>
    %24 = arith.mulf %23, %5 : vector<8x1xf32>
    %25 = arith.addf %22, %24 : vector<8x1xf32>
    %26 = vector.broadcast %8 : f32 to vector<8x1xf32>
    %27 = arith.mulf %26, %20 : vector<8x1xf32>
    %28 = arith.addf %25, %27 : vector<8x1xf32>
    %29 = vector.broadcast %9 : f32 to vector<8x1xf32>
    %30 = arith.addf %28, %29 : vector<8x1xf32>
    %31 = arith.negf %30 : vector<8x1xf32>
    %32 = math.exp %31 : vector<8x1xf32>
    %cst_8 = arith.constant 1.000000e+00 : f32
    %33 = vector.broadcast %cst_8 : f32 to vector<8x1xf32>
    %34 = arith.addf %33, %32 : vector<8x1xf32>
    %35 = arith.divf %33, %34 : vector<8x1xf32>
    %36 = vector.broadcast %35 : vector<8x1xf32> to vector<8x256xf32>
    %37 = arith.mulf %1, %36 : vector<8x256xf32>
    %c0_9 = arith.constant 0 : index
    %c0_10 = arith.constant 0 : index
    %c0_11 = arith.constant 0 : index
    %38 = vector.load %arg4[%c0_9, %c0_10, %c0_11] : memref<1x8x256xf32, #tpu.memory_space<vmem>>, vector<1x8x256xf32>
    %39 = vector.shape_cast %38 : vector<1x8x256xf32> to vector<8x256xf32>
    %40 = vector.shape_cast %37 : vector<8x256xf32> to vector<1x8x256xf32>
    tpu.vector_store %arg4[%c0_9, %c0_10, %c0_11], %40 {strides = array<i32>} : memref<1x8x256xf32, #tpu.memory_space<vmem>>, vector<1x8x256xf32>,
    return
  }
  func.func @transform_0(%arg0: i32) -> i32 {
    %c0_i32 = arith.constant 0 : i32
    %c0_i32_0 = arith.constant 0 : i32
    return %c0_i32 : i32
  }
  func.func @transform_1(%arg0: i32) -> i32 {
    %c0_i32 = arith.constant 0 : i32
    %c0_i32_0 = arith.constant 0 : i32
    return %c0_i32 : i32
  }
  func.func @transform_2(%arg0: i32) -> (i32, i32, i32) {
    %c0_i32 = arith.constant 0 : i32
    %c0_i32_0 = arith.constant 0 : i32
    %c0_i32_1 = arith.constant 0 : i32
    return %arg0, %c0_i32, %c0_i32_0 : i32, i32, i32
  }
  func.func @transform_3(%arg0: i32) -> (i32, i32, i32) {
    %c0_i32 = arith.constant 0 : i32
    %c0_i32_0 = arith.constant 0 : i32
    %c0_i32_1 = arith.constant 0 : i32
    return %arg0, %c0_i32, %c0_i32_0 : i32, i32, i32
  }
}

</mosaic_0001>

<bundles_post_ra>
// kernel: tpu_custom_call.1
= control target key start
LH: loop header
LB: loop body
LE: loop exit
PB: predicated region body
PF: predicated region fallthrough
CT: control target
= control target key end

     0   :  { %s743_s0 = inlined_call_operand.vmem [shape: f32[3], index: 0, kind: input, shape index: {}]   ;;  %s744_s1 = inlined_call_operand.<no memory space> [shape: f32[1], index: 1, kind: input, shape index: {}]   ;;  %s745_s2 = inlined_call_operand.hbm [shape: f32[2,8,256], index: 2, kind: input, shape index: {}]   ;;  %s746_s3 = inlined_call_operand.hbm [shape: f32[2,8,256], index: 3, kind: output, shape index: {}]  }
   0x1   :  { %8 = sst [smem:[#allocation2]] %s744_s1 }
   0x2   :  { %9 = vsyncpa [#allocation6], 0 }
   0x3   :  { %10 = vsyncpa [#allocation4], 0 }
   0x4   :  { %12 = vsyncpa [#allocation4 + $0x1], 0 }
   0x5   :  { %13 = vsyncpa [#allocation5], 0 }
   0x6   :  { %15 = vsyncpa [#allocation5 + $0x1], 0  ;;  %s567_s14 = smov 0   ;;  %s569_s15 = smov 0  }
   0x7   :  { %s571_s16 = smov 0   ;;  %s573_s17 = smov 0  }
   0x8 LB: > { %s588_s1 = sadd.s32 4294967295, %s538_s17   ;;  %s343_s18 = sadd.s32 4294967294, %s538_s17   ;;  %s538_s17 = sphi %s573_s17, %s769_s17   ;;  %s534_s16 = sphi %s571_s16, %s768_s16   ;;  %s530_s15 = sphi %s569_s15, %s767_s15   ;;  %s526_s14 = sphi %s567_s14, %s766_s14  }
   0x9   : > { %p83_p0 = scmp.ne.s32.totalorder %s530_s15, %s526_s14  ;;  %p747_p1 = scmp.eq.s32.totalorder %s588_s1, 0 }
   0xa   : > { %p113_p3 = scmp.eq.s32.totalorder %s343_s18, 1  ;;  %p344_p5 = scmp.ge.s32.totalorder %s538_s17, 1 }
   0xb   : > { %p597_p4 = por %p747_p1, %p83_p0  ;;  %p120_p7 = scmp.lt.s32.totalorder %s538_s17, 3 }
   0xc   : > { %p602_p6 = por %p113_p3, %p83_p0  ;;  %s133_s23 = sshll.u32 %s743_s0, 4  ;;  %s134_s23 = int_to_ptr.vmem [resolvable:$true] %s133_s23 }
   0xd   : > { %s751_s19 = scalar_select %p597_p4, 1, 0 }
   0xe   : > { %s752_s20 = scalar_select %p602_p6, 1, 0 }
   0xf   : > { %p610_p8 = pnand %p344_p5, %p120_p7  ;;  %s618_s25 = sadd.s32 1, %s538_s17  }
  0x10   : > { %s67_s27 = ssub.s32 %s538_s17, %s618_s25  ;;  %s70_s29 = sadd.s32 1, %s534_s16 }
  0x11   : > { %s753_s24 = scalar_select %p610_p8, 1, 0 }
  0x12   : > { %p372_p10 = pneg %p610_p8  ;;  %p628_p12 = scmp.eq.s32.totalorder %s67_s27, 0 }
  0x13   : > { %p77_p13 = scmp.ne.s32.totalorder %s534_s16, %s530_s15  ;;  %s427_s30 = scalar_lea.vmem %s134_s23, 16 }
  0x14   : > { %p622_p11 = pnand %p372_p10, %p747_p1  ;;  %p428_p0 = scmp.ne.s32.totalorder %s134_s23, %s427_s30 }
  0x15   : > { %p435_p9 = scmp.lt.s32.totalorder %s134_s23, %s134_s23  ;;  %p436_p2 = scmp.lt.s32.totalorder %s427_s30, %s427_s30 }
  0x16   : > { %p429_p3 = pneg %p622_p11 }
  0x17   : > { %p437_p10 = por %p436_p2, %p435_p9 }
  0x18   : > { %p430_p5 = pnand %p429_p3, %p428_p0 }
  0x1a   : > { %p431_p7 = pneg %p430_p5 }
  0x1c   : > { %p438_p1 = pnand %p437_p10, %p431_p7 }
  0x1e   : > { %441 = shalt.err (!%p438_p1)
}
  0x1f   : > { %s540_s4 = smov [#allocation3]   ;;  %p78_p2 = scmp.eq.s32.totalorder %s538_s17, 0 }
  0x20   : > { %375 = dma.vmem_to_smem (!%p622_p11), %s134_s23, 16, %s540_s4, [#allocation6]  }
  0x21   : > { %s642_s5 = scalar_select %p628_p12, %s534_s16, %s70_s29  }
  0x22   : > { %p756_p1 = scmp.eq.s32.totalorder %s588_s1, 1  ;;  %p385_p0 = scmp.lt.s32.totalorder %s538_s17, 2 }
  0x23   : > { %s147_s7 = sand.u32 1, %s534_s16   ;;  %p79_p3 = por %p78_p2, %p77_p13 }
  0x24   : > { %p650_p9 = por %p756_p1, %p77_p13  ;;  %s347_s8 = sshll.u32 %s147_s7, 4 }
  0x25   : > { %s362_s9 = sshll.u32 %s538_s17, 8  ;;  %s151_s13 = scalar_lea.vmem [#allocation7], %s347_s8 }
  0x26   : > { %s757_s6 = scalar_select %p650_p9, 1, 0 }
  0x27   : > { %s663_s12 = scalar_lea.hbm %s745_s2, %s362_s9  ;;  %s159_s18 = sshll.u32 %s151_s13, 4  ;;  %s160_s18 = int_to_ptr.vmem [resolvable:$true] %s159_s18 }
  0x28   : > { %p665_p11 = pnand %p385_p0, %p79_p3  ;;  %s148_s22 = scalar_lea.sflag [#allocation4], %s147_s7 }
  0x29   : > { %s442_s23 = scalar_lea.hbm %s663_s12, 256  ;;  %s447_s28 = scalar_lea.hbm %s745_s2, 512 }
  0x2a   : > { %p443_p12 = scmp.ne.s32.totalorder %s663_s12, %s442_s23  ;;  %p444_p13 = pneg %p665_p11 }
  0x2b   : > { %p448_p10 = scmp.lt.s32.totalorder %s663_s12, %s745_s2  ;;  %p449_p2 = scmp.lt.s32.totalorder %s447_s28, %s442_s23 }
  0x2c   : > { %p445_p5 = pnand %p444_p13, %p443_p12 }
  0x2d   : > { %p450_p1 = por %p449_p2, %p448_p10 }
  0x2e   : > { %p446_p7 = pneg %p445_p5 }
  0x30   : > { %p451_p0 = pnand %p450_p1, %p446_p7 }
  0x32   : > { %454 = shalt.err (!%p451_p0)
}
  0x33   : > { %s455_s4 = scalar_lea.vmem %s160_s18, 256  ;;  %s541_s7 = smov [#allocation7]  }
  0x34   : > { %p456_p3 = scmp.ne.s32.totalorder %s160_s18, %s455_s4  ;;  %s460_s8 = sshll.u32 %s541_s7, 4  ;;  %s461_s8 = int_to_ptr.vmem [resolvable:$false] %s460_s8 }
  0x35   : > { %s462_s9 = scalar_lea.vmem %s461_s8, 512  ;;  %p463_p12 = scmp.lt.s32.totalorder %s160_s18, %s461_s8 }
  0x36   : > { %p458_p6 = pnand %p456_p3, %p444_p13  ;;  %p464_p5 = scmp.lt.s32.totalorder %s462_s9, %s455_s4 }
  0x38   : > { %p459_p9 = pneg %p458_p6  ;;  %p465_p4 = por %p464_p5, %p463_p12 }
  0x3a   : > { %p466_p8 = pnand %p465_p4, %p459_p9 }
  0x3c   : > { %469 = shalt.err (!%p466_p8)
}
  0x3d   : > { %379 = dma.hbm_to_vmem [thread:$0]  (!%p665_p11), %s663_s12, 256, %s160_s18, %s148_s22  }
  0x3e   : > { %p759_p7 = scmp.ne.s32.totalorder %s753_s24, 0 }
  0x3f   : > { %p760_p10 = scmp.eq.s32.totalorder (!%p759_p7), %s588_s1, 0 }
  0x40   : > { %168 = sbr.rel (%p759_p7) target bundleno = 401 (0x191), region = 32 }
  0x45   : > { %513 = dma.done.wait (%p760_p10), [#allocation6], 16   ;;  %p761_p6 = pmov %p760_p10 }
  0x46   : > { %s690_s10 = sand.u32 1, %s530_s15   ;;  %p762_p4 = scmp.ne.s32.totalorder %s751_s19, 0 }
  0x47   : > { %515 = vsyncadd (%p761_p6), [#allocation6], 4294967280  ;;  %s352_s11 = sshll.u32 %s690_s10, 4  ;;  %s175_s13 = scalar_lea.sflag [#allocation4], %s690_s10 }
  0x48   : > { %s178_s12 = scalar_lea.vmem [#allocation7], %s352_s11 }
  0x49   : > { %517 = dma.done.wait (%p762_p4), %s175_s13, 256  }
  0x4a   : > { %519 = vsyncadd (%p762_p4), %s175_s13, 4294967040 }
  0x4b   : > { %183 = sfence }
  0x4c   : > { %v202_v0 = vld [vmem:[%s178_s12] sm:$0xff]  ;;  %v203_v1 = vld [vmem:[%s178_s12 + $0x8] sm:$0xff]  ;;  %v542_v3 = vmov 0   ;;  %s209_s24 = sld [smem:[#allocation3]]  ;;  %v213_v4 = vlaneseq  ;;  %s363_s19 = sshll.u32 %s588_s1, 8 }
  0x4d   : > { %v204_v2 = vadd.f32 %v203_v1, %v202_v0  ;;  %422 = vset.pattern.permute.xlu0 %v542_v3  ;;  %s354_s18 = sld [smem:[#allocation3 + $0x1]]  ;;  %s201_s23 = scalar_lea.vmem [#allocation8], %s352_s11 }
  0x4e   : > { %s355_s21 = sld [smem:[#allocation3 + $0x2]]  ;;  %v214_v5 = vshrl.u32 %v213_v4, 7  ;;  %s261_s26 = sshll.u32 %s201_s23, 4  ;;  %s262_s26 = int_to_ptr.vmem [resolvable:$true] %s261_s26 }
  0x4f   : > { %205 = vadd.xlane.f32.xlu0 %v204_v2  ;;  %s212_s22 = sld [smem:[#allocation2]]  ;;  %s706_s29 = scalar_lea.hbm %s746_s3, %s363_s19 }
  0x50   : > { %vm215_vm0 = vcmp.eq.s32.totalorder %v214_v5, 0  ;;  %vm218_vm1 = vcmp.eq.s32.totalorder %v214_v5, 7  ;;  %s247_s30 = scalar_lea.sflag [#allocation5], %s690_s10  ;;  %s470_s4 = scalar_lea.vmem %s262_s26, 256 }
  0x51   : > { %p471_p8 = scmp.ne.s32.totalorder %s262_s26, %s470_s4  ;;  %p763_p9 = scmp.ne.s32.totalorder %s757_s6, 0 }
  0x52   : > { %v221_v8 = vstv %s209_s24  ;;  %s543_s1 = smov [#allocation8]  }
  0x53   : > { %v223_v9 = vstv %s354_s18  ;;  %p472_p11 = pnand %p471_p8, %p763_p9  ;;  %s474_s7 = sshll.u32 %s543_s1, 4  ;;  %s475_s7 = int_to_ptr.vmem [resolvable:$false] %s474_s7 }
  0x54   : > { %v226_v12 = vstv %s355_s21  ;;  %s476_s8 = scalar_lea.vmem %s475_s7, 512  ;;  %p477_p2 = scmp.lt.s32.totalorder %s262_s26, %s475_s7 }
  0x55   : > { %v229_v19 = vstv %s212_s22  ;;  %p473_p13 = pneg %p472_p11  ;;  %p478_p1 = scmp.lt.s32.totalorder %s476_s8, %s470_s4 }
  0x57   : > { %p479_p0 = por %p478_p1, %p477_p2 }
  0x59   : > { %p480_p3 = pnand %p479_p0, %p473_p13 }
  0xd8   : > { %v206_v6 = vpop.xlane.xlu0 %205 }
  0xd9   : > { %v208_v7 = vmul.f32 0.00390625, %v206_v6 }
  0xdb   : > { %v216_v10 = vrot.slane %v208_v7, 7  ;;  %v219_v11 = vrot.slane %v208_v7, 1  ;;  %v224_v16 = vmul.f32 %v223_v9, %v208_v7 }
  0xdd   : > { %v217_v13 = vsel %vm215_vm0, 0.0, %v216_v10  ;;  %v220_v14 = vsel %vm218_vm1, 0.0, %v219_v11 }
  0xde   : > { %v222_v15 = vmul.f32 %v221_v8, %v217_v13  ;;  %v227_v18 = vmul.f32 %v226_v12, %v220_v14 }
  0xe0   : > { %v225_v17 = vadd.f32 %v224_v16, %v222_v15 }
  0xe2   : > { %v228_v20 = vadd.f32 %v227_v18, %v225_v17 }
  0xe4   : > { %v230_v21 = vadd.f32 %v229_v19, %v228_v20 }
  0xe6   : > { %v356_v22 = vmul.f32 -1.442695, %v230_v21 }
  0xe8   : > { %423 = vpow2.f32 %v356_v22 }
  0xf5   : > { %v424_v23 = vpop.eup %423 }
  0xf6   : > { %v234_v24 = vadd.f32 1.0, %v424_v23 }
  0xf8   : > { %425 = vrcp.f32 %v234_v24 }
 0x105   : > { %v426_v25 = vpop.eup %425 }
 0x106   : > { %239 = vperm.xlu0 %422, %v426_v25  }
 0x181   : > { %v240_v26 = vpop.permute.xlu0 %239 }
 0x182   : > { %v242_v27 = vmul.f32 %v240_v26, %v202_v0  ;;  %v243_v28 = vmul.f32 %v240_v26, %v203_v1 }
 0x184   : > { %244 = vst [vmem:[%s201_s23] sm:$0xff] %v242_v27  ;;  %245 = vst [vmem:[%s201_s23 + $0x8] sm:$0xff] %v243_v28 }
 0x185   : > { %483 = shalt.err (!%p480_p3)
}
 0x186   : > { %s484_s9 = scalar_lea.hbm %s706_s29, 256  ;;  %s488_s13 = scalar_lea.hbm %s746_s3, 512 }
 0x187   : > { %p485_p12 = scmp.ne.s32.totalorder %s706_s29, %s484_s9  ;;  %p489_p10 = scmp.lt.s32.totalorder %s706_s29, %s746_s3 }
 0x188   : > { %p490_p6 = scmp.lt.s32.totalorder %s488_s13, %s484_s9 }
 0x189   : > { %p486_p5 = pnand %p485_p12, %p763_p9 }
 0x18a   : > { %p491_p4 = por %p490_p6, %p489_p10 }
 0x18b   : > { %p487_p7 = pneg %p486_p5 }
 0x18d   : > { %p492_p8 = pnand %p491_p4, %p487_p7 }
 0x18f   : > { %495 = shalt.err (!%p492_p8)
}
 0x190   : > { %370 = dma.vmem_to_hbm [thread:$0]  (%p763_p9), %s262_s26, 256, %s706_s29, %s247_s30  }
 0x191 PF: > { %s273_s18 = sand.u32 1, %s526_s14   ;;  %p764_p11 = scmp.ne.s32.totalorder %s752_s20, 0 }
 0x192   : > { %p765_p13 = scmp.ge.s32.totalorder %s538_s17, 2  ;;  %s274_s21 = scalar_lea.sflag [#allocation5], %s273_s18 }
 0x194   : > { %p381_p2 = pnand %p765_p13, %p764_p11 }
 0x196   : > { %p382_p1 = pneg %p381_p2 }
 0x198   : > { %521 = dma.done.wait (%p382_p1), %s274_s21, 256  }
 0x199   : > { %523 = vsyncadd (%p382_p1), %s274_s21, 4294967040  ;;  %p18_p0 = scmp.ge.s32.totalorder %s618_s25, 4   ;;  %s766_s14 = smov %s530_s15 }
 0x19a   : > { %s767_s15 = smov %s534_s16  ;;  %s768_s16 = smov %s642_s5 }
 0x19b   : > { %s769_s17 = smov %s618_s25  ;;  %20 = sbr.rel (!%p18_p0) target bundleno = 8 (0x8), region = 82 }
 0x1a0   :  { %279 = vsyncpa [#allocation4], 1 }
 0x1a1   :  { %281 = vsyncpa [#allocation4 + $0x1], 1 }
 0x1a2   :  { %282 = vsyncpa [#allocation5], 1 }
 0x1a3   :  { %284 = vsyncpa [#allocation5 + $0x1], 1 }
 0x1a4   :  { %285 = vsyncpa [#allocation6], 1 }
 0x1a5   :  { %287 = vsyncpa [#allocation6 + $0x1], 1 }

</bundles_post_ra>
